<compile_context>
chip_gen: v6e
topology: v6e:2x2x1
jax: 0.10.0
libtpu: 0.0.40
codegen_flags: <defaults>
</compile_context>

<pallas_src>
import functools

import jax
import jax.numpy as jnp
from jax.experimental import pallas as pl
from jax.experimental.pallas import tpu as pltpu

LANES = 128
SUBLANES = 8
GROUP = SUBLANES * LANES          # 1024 elements = one (8, 128) f32 vreg tile
MAX_TILE_GROUPS = 256             # (256, 8, 128) f32 = 1 MiB per input block


def _acc_sums_kernel(tol_ref, x_ref, y_ref, out_ref, *, groups, tile_g):
    """Per-block partial sums for the ACC numerator / denominator.

    x_ref, y_ref : (tile_g, 8, 128) input blocks.
    out_ref      : (1, 2, 8, 128) lane-wise partial sums for this block:
                   [0] sum(|y-x| where |y-x| < tol), [1] sum(|y-x| non-NaN).
    """
    i = pl.program_id(0)
    tol = tol_ref[0]

    x = x_ref[...].astype(jnp.float32)
    y = y_ref[...].astype(jnp.float32)
    diff = jnp.abs(y - x)

    # Mask out Pallas-padded (unspecified) groups of the final partial block.
    remaining = groups - i * tile_g
    g_ids = jax.lax.broadcasted_iota(jnp.int32, (tile_g, SUBLANES, LANES), 0)
    in_bounds = g_ids < remaining

    # NaN compares False against tol  -> excluded from numerator;
    # (diff == diff) is False for NaN -> excluded from denominator.
    # Matches torch: diff[diff < tol].sum() / diff[diff == diff].sum().
    correct = jnp.where(jnp.logical_and(in_bounds, diff < tol), diff, 0.0)
    valid = jnp.where(jnp.logical_and(in_bounds, diff == diff), diff, 0.0)

    # Reduce over the leading (vreg) axis only: pure VPU adds, lane-dense
    # (8,128) result.  Cross-lane reduction happens once, outside the kernel.
    out_ref[0, 0] = jnp.sum(correct, axis=0)
    out_ref[0, 1] = jnp.sum(valid, axis=0)


def _acc_partial_sums(x, y, tol):
    assert x.shape == y.shape
    n = x.size
    xf = x.reshape(-1)
    yf = y.reshape(-1)

    if n % GROUP != 0:
        # TODO(synk): misaligned sizes take a zero-pad copy; zero padding is
        # value-neutral (contributes 0 to both sums).
        pad = GROUP - n % GROUP
        xf = jnp.pad(xf, (0, pad))
        yf = jnp.pad(yf, (0, pad))

    groups = xf.size // GROUP
    x3 = xf.reshape(groups, SUBLANES, LANES)   # free reshape (contiguous)
    y3 = yf.reshape(groups, SUBLANES, LANES)

    tile_g = min(MAX_TILE_GROUPS, groups)
    nblocks = pl.cdiv(groups, tile_g)

    kernel = functools.partial(_acc_sums_kernel, groups=groups, tile_g=tile_g)
    partials = pl.pallas_call(
        kernel,
        out_shape=jax.ShapeDtypeStruct((nblocks, 2, SUBLANES, LANES), jnp.float32),
        grid_spec=pltpu.PrefetchScalarGridSpec(
            num_scalar_prefetch=0,
            grid=(nblocks,),
            in_specs=[
                pl.BlockSpec(memory_space=pltpu.SMEM),                        # tolerance
                pl.BlockSpec((tile_g, SUBLANES, LANES), lambda i: (i, 0, 0)),  # x
                pl.BlockSpec((tile_g, SUBLANES, LANES), lambda i: (i, 0, 0)),  # y
            ],
            out_specs=pl.BlockSpec((1, 2, SUBLANES, LANES), lambda i: (i, 0, 0, 0)),
        ),
        compiler_params=pltpu.CompilerParams(
            dimension_semantics=("parallel",)),
    )(tol, x3, y3)

    # (nblocks, 2, 8, 128) -> (2,): [numerator, denominator]
    return jnp.sum(partials, axis=(0, 2, 3))


@jax.jit
def acc_loss(x, y, tolerance=30.0):
    """Equivalent of ACCLoss.forward(x, y, tolerance). Returns a JAX scalar."""
    tol = jnp.asarray(tolerance, dtype=jnp.float32).reshape(1)
    sums = _acc_partial_sums(x, y, tol)
    return sums[0] / sums[1]


if __name__ == "__main__":
    key = jax.random.PRNGKey(0)
    kx, ky = jax.random.split(key)
    # Small NCHW-shaped example inputs (the loss is shape-agnostic elementwise).
    x = jax.random.uniform(kx, (2, 4, 16, 16), jnp.float32) * 100.0
    y = jax.random.uniform(ky, (2, 4, 16, 16), jnp.float32) * 100.0

    out = jax.block_until_ready(acc_loss(x, y, 30.0))

    # Pure-JAX reference check.
    diff = jnp.abs(y - x)
    ref = float(jnp.sum(jnp.where(diff < 30.0, diff, 0.0))
                / jnp.sum(jnp.where(diff == diff, diff, 0.0)))
    assert abs(float(out) - ref) <= 1e-4 * max(1.0, abs(ref)), (float(out), ref)

    print("KERNEL_OK")
</pallas_src>

<mosaic_0001>
module attributes {stable_mosaic.version = 11 : i64} {
  func.func @_acc_sums_kernel(%arg0: i32, %arg1: memref<1xf32, #tpu.memory_space<smem>>, %arg2: memref<2x8x128xf32, #tpu.memory_space<vmem>>, %arg3: memref<2x8x128xf32, #tpu.memory_space<vmem>>, %arg4: memref<1x2x8x128xf32, #tpu.memory_space<vmem>>) attributes {dimension_semantics = [#tpu.dimension_semantics<parallel>], iteration_bounds = array<i64: 1>, scalar_prefetch = 0 : i64, scratch_operands = 0 : i64, tpu.core_type = #tpu.core_type<tc>, window_params = [{transform_indices = @transform_0, window_bounds = array<i64: 1>}, {transform_indices = @transform_1, window_bounds = array<i64: 2, 8, 128>}, {transform_indices = @transform_2, window_bounds = array<i64: 2, 8, 128>}, {transform_indices = @transform_3, window_bounds = array<i64: 1, 2, 8, 128>}]} {
    %c0 = arith.constant 0 : index
    %0 = memref.load %arg1[%c0] : memref<1xf32, #tpu.memory_space<smem>>
    %c0_0 = arith.constant 0 : index
    %c0_1 = arith.constant 0 : index
    %c0_2 = arith.constant 0 : index
    %1 = vector.load %arg2[%c0_0, %c0_1, %c0_2] : memref<2x8x128xf32, #tpu.memory_space<vmem>>, vector<2x8x128xf32>
    %c0_3 = arith.constant 0 : index
    %c0_4 = arith.constant 0 : index
    %c0_5 = arith.constant 0 : index
    %2 = vector.load %arg3[%c0_3, %c0_4, %c0_5] : memref<2x8x128xf32, #tpu.memory_space<vmem>>, vector<2x8x128xf32>
    %3 = arith.subf %2, %1 : vector<2x8x128xf32>
    %4 = math.absf %3 : vector<2x8x128xf32>
    %c2_i32 = arith.constant 2 : i32
    %5 = arith.muli %arg0, %c2_i32 : i32
    %c2_i32_6 = arith.constant 2 : i32
    %6 = arith.subi %c2_i32_6, %5 : i32
    %7 = tpu.iota {dimensions = array<i32: 0>} : vector<2x8x128xi32>
    %8 = vector.broadcast %6 : i32 to vector<2x8x128xi32>
    %9 = arith.cmpi slt, %7, %8 : vector<2x8x128xi32>
    %10 = vector.broadcast %0 : f32 to vector<2x8x128xf32>
    %11 = arith.cmpf olt, %4, %10 : vector<2x8x128xf32>
    %12 = arith.andi %9, %11 : vector<2x8x128xi1>
    %cst = arith.constant 0.000000e+00 : f32
    %13 = vector.broadcast %cst : f32 to vector<2x8x128xf32>
    %14 = arith.select %12, %4, %13 : vector<2x8x128xi1>, vector<2x8x128xf32>
    %15 = arith.cmpf oeq, %4, %4 : vector<2x8x128xf32>
    %16 = arith.andi %9, %15 : vector<2x8x128xi1>
    %cst_7 = arith.constant 0.000000e+00 : f32
    %17 = vector.broadcast %cst_7 : f32 to vector<2x8x128xf32>
    %18 = arith.select %16, %4, %17 : vector<2x8x128xi1>, vector<2x8x128xf32>
    %cst_8 = arith.constant dense<0.000000e+00> : vector<8x128xf32>
    %19 = vector.multi_reduction <add>, %14, %cst_8 [0] : vector<2x8x128xf32> to vector<8x128xf32>
    %c0_9 = arith.constant 0 : index
    %c0_10 = arith.constant 0 : index
    %c0_11 = arith.constant 0 : index
    %c0_12 = arith.constant 0 : index
    %20 = vector.load %arg4[%c0_9, %c0_10, %c0_11, %c0_12] : memref<1x2x8x128xf32, #tpu.memory_space<vmem>>, vector<1x1x8x128xf32>
    %21 = vector.shape_cast %20 : vector<1x1x8x128xf32> to vector<8x128xf32>
    %22 = vector.shape_cast %19 : vector<8x128xf32> to vector<1x1x8x128xf32>
    tpu.vector_store %arg4[%c0_9, %c0_10, %c0_11, %c0_12], %22 {strides = array<i32>} : memref<1x2x8x128xf32, #tpu.memory_space<vmem>>, vector<1x1x8x128xf32>,
    %cst_13 = arith.constant dense<0.000000e+00> : vector<8x128xf32>
    %23 = vector.multi_reduction <add>, %18, %cst_13 [0] : vector<2x8x128xf32> to vector<8x128xf32>
    %c0_14 = arith.constant 0 : index
    %c1 = arith.constant 1 : index
    %c0_15 = arith.constant 0 : index
    %c0_16 = arith.constant 0 : index
    %24 = vector.load %arg4[%c0_14, %c1, %c0_15, %c0_16] : memref<1x2x8x128xf32, #tpu.memory_space<vmem>>, vector<1x1x8x128xf32>
    %25 = vector.shape_cast %24 : vector<1x1x8x128xf32> to vector<8x128xf32>
    %26 = vector.shape_cast %23 : vector<8x128xf32> to vector<1x1x8x128xf32>
    tpu.vector_store %arg4[%c0_14, %c1, %c0_15, %c0_16], %26 {strides = array<i32>} : memref<1x2x8x128xf32, #tpu.memory_space<vmem>>, vector<1x1x8x128xf32>,
    return
  }
  func.func @transform_0(%arg0: i32) -> i32 {
    %c0_i32 = arith.constant 0 : i32
    %c0_i32_0 = arith.constant 0 : i32
    return %c0_i32 : i32
  }
  func.func @transform_1(%arg0: i32) -> (i32, i32, i32) {
    %c0_i32 = arith.constant 0 : i32
    %c0_i32_0 = arith.constant 0 : i32
    %c0_i32_1 = arith.constant 0 : i32
    return %arg0, %c0_i32, %c0_i32_0 : i32, i32, i32
  }
  func.func @transform_2(%arg0: i32) -> (i32, i32, i32) {
    %c0_i32 = arith.constant 0 : i32
    %c0_i32_0 = arith.constant 0 : i32
    %c0_i32_1 = arith.constant 0 : i32
    return %arg0, %c0_i32, %c0_i32_0 : i32, i32, i32
  }
  func.func @transform_3(%arg0: i32) -> (i32, i32, i32, i32) {
    %c0_i32 = arith.constant 0 : i32
    %c0_i32_0 = arith.constant 0 : i32
    %c0_i32_1 = arith.constant 0 : i32
    %c0_i32_2 = arith.constant 0 : i32
    return %arg0, %c0_i32, %c0_i32_0, %c0_i32_1 : i32, i32, i32, i32
  }
}

</mosaic_0001>

<bundles_post_ra>
// kernel: acc_loss.1
= control target key start
LH: loop header
LB: loop body
LE: loop exit
PB: predicated region body
PF: predicated region fallthrough
CT: control target
= control target key end

     0   :  { %s93_s0 = inlined_call_operand.<no memory space> [shape: f32[1], index: 0, kind: input, shape index: {}]   ;;  %s94_s1 = inlined_call_operand.vmem [shape: f32[2,8,128], index: 1, kind: input, shape index: {}]   ;;  %s95_s2 = inlined_call_operand.vmem [shape: f32[2,8,128], index: 2, kind: input, shape index: {}]   ;;  %s96_s3 = inlined_call_operand.vmem [shape: f32[1,2,8,128], index: 3, kind: output, shape index: {}]  }
   0x1   :  { %v16_v0 = vld [vmem:[%s94_s1] sm:$0xff]  ;;  %v17_v1 = vld [vmem:[%s94_s1 + $0x8] sm:$0xff]  ;;  %v29_v6 = vstv %s93_s0 }
   0x2   :  { %v18_v2 = vld [vmem:[%s95_s2] sm:$0xff]  ;;  %v19_v3 = vld [vmem:[%s95_s2 + $0x8] sm:$0xff] }
   0x3   :  { %v20_v4 = vsub.f32 %v18_v2, %v16_v0  ;;  %v21_v5 = vsub.f32 %v19_v3, %v17_v1 }
   0x5   :  { %v22_v7 = vand.u32 2147483647, %v20_v4  ;;  %v23_v8 = vand.u32 2147483647, %v21_v5 }
   0x7   :  { %vm30_vm0 = vcmp.lt.f32.partialorder %v22_v7, %v29_v6  ;;  %vm36_vm1 = vcmp.eq.f32.partialorder %v22_v7, %v22_v7  ;;  %vm31_vm2 = vcmp.lt.f32.partialorder %v23_v8, %v29_v6  ;;  %vm37_vm3 = vcmp.eq.f32.partialorder %v23_v8, %v23_v8 }
   0x8   :  { %v34_v9 = vsel %vm30_vm0, %v22_v7, 0.0  ;;  %v40_v10 = vsel %vm36_vm1, %v22_v7, 0.0  ;;  %v35_v11 = vsel %vm31_vm2, %v23_v8, 0.0  ;;  %v41_v12 = vsel %vm37_vm3, %v23_v8, 0.0 }
   0x9   :  { %v42_v13 = vadd.f32 %v35_v11, %v34_v9  ;;  %v44_v14 = vadd.f32 %v41_v12, %v40_v10 }
   0xb   :  { %43 = vst [vmem:[%s96_s3] sm:$0xff] %v42_v13  ;;  %51 = vst [vmem:[%s96_s3 + $0x8] sm:$0xff] %v44_v14 }

</bundles_post_ra>
